<compile_context>
chip_gen: v7x
topology: tpu7x:2x2x1
jax: 0.10.0
libtpu: 0.0.40
codegen_flags: <defaults>
</compile_context>

<pallas_src>
import functools

import jax
import jax.numpy as jnp
from jax.experimental import pallas as pl
from jax.experimental.pallas import tpu as pltpu

_SUBLANE = 8     # sublane granularity for batch tiles.
_OUT_DIM = 3     # module output size.
_OUT_PAD = 8     # final layer padded to 8 columns (aligned, 32 B/row writeback).
_HID = 128
_IN_DIM = 6


def _round_up(x, m):
    return (x + m - 1) // m * m


def fcnet_kernel(x_ref,
                 w1_ref, b1_ref,
                 w2_ref, b2_ref,
                 w3_ref, b3_ref,
                 w4_ref, b4_ref,
                 o_ref,
                 *, act_dtype):
    """Fully fused 4-layer MLP (tanh after every layer) on one batch tile.

    All matmuls accumulate in f32 (preferred_element_type) regardless of the
    operand storage dtype; bias adds happen in f32; the result is then cast to
    `act_dtype` *before* tanh (bf16 tanh on v6e/v7x halves EUP time and feeds
    the next bf16 matmul with no extra cast).  The last layer is zero-padded
    to 8 output columns; only 32 B/row goes back to HBM.
    """
    f32 = jnp.float32
    x = x_ref[...]                                  # f32 (tile, 6); tiny K=6 layer stays f32
    h = jnp.tanh((jnp.dot(x, w1_ref[...], preferred_element_type=f32)
                  + b1_ref[...]).astype(act_dtype))
    h = jnp.tanh((jnp.dot(h.astype(w2_ref.dtype), w2_ref[...],
                          preferred_element_type=f32)
                  + b2_ref[...]).astype(act_dtype))
    h = jnp.tanh((jnp.dot(h.astype(w3_ref.dtype), w3_ref[...],
                          preferred_element_type=f32)
                  + b3_ref[...]).astype(act_dtype))
    out = jnp.tanh((jnp.dot(h.astype(w4_ref.dtype), w4_ref[...],
                            preferred_element_type=f32)
                    + b4_ref[...]).astype(act_dtype))
    o_ref[...] = out.astype(o_ref.dtype)


def prepare_fcnet_params(params, compute_dtype=jnp.bfloat16):
    """One-time parameter prep (hoisted out of the per-call forward path).

    * Pads the final layer from 3 -> 8 output columns with zeros.
    * Casts the three 128x128 weight matrices to `compute_dtype` (bf16
      recommended: the MXU is bf16-native on v5e/v6e/v7x).
    * Keeps the K=6 first-layer weight and every bias in f32 (accuracy).
    """
    pad = _OUT_PAD - params["w4"].shape[1]
    w4 = jnp.pad(params["w4"], ((0, 0), (0, pad)))
    b4 = jnp.pad(params["b4"], ((0, 0), (0, pad)))
    return {
        "w1": params["w1"].astype(jnp.float32),
        "b1": params["b1"].astype(jnp.float32),
        "w2": params["w2"].astype(compute_dtype),
        "b2": params["b2"].astype(jnp.float32),
        "w3": params["w3"].astype(compute_dtype),
        "b3": params["b3"].astype(jnp.float32),
        "w4": w4.astype(compute_dtype),
        "b4": b4.astype(jnp.float32),
    }


@functools.partial(jax.jit, static_argnames=("block_b", "act_dtype"))
def fcnet_forward(x, prepared, *, block_b=8192, act_dtype=None):
    """x: (B, 6) f32. prepared: output of prepare_fcnet_params. Returns (B, 3) f32."""
    B, in_dim = x.shape

    # Activation (tanh) dtype: default to the 128x128 weight dtype (bf16 on
    # v6e/v7x); pass act_dtype=jnp.float32 on v5e (no bf16 VPU/EUP).
    act_dt = prepared["w2"].dtype if act_dtype is None else act_dtype

    # --- Batch tiling -------------------------------------------------------
    # Big tiles amortize per-grid-step overhead; shrink for small batches and
    # keep >= 2 tiles for moderate batches so the "parallel" batch axis can be
    # split across v7x's two TensorCores.  Tile stays a multiple of 8.
    eff_block = min(block_b, _round_up(B, _SUBLANE))
    if B >= 2 * _SUBLANE:
        eff_block = min(eff_block, _round_up((B + 1) // 2, _SUBLANE))
    eff_block = max(_SUBLANE, _round_up(eff_block, _SUBLANE))
    grid_b = pl.cdiv(B, eff_block)
    b_pad = grid_b * eff_block

    xc = x.astype(jnp.float32)
    if b_pad != B:
        xc = jnp.pad(xc, ((0, b_pad - B), (0, 0)))

    x_spec = pl.BlockSpec((eff_block, in_dim), lambda i: (i, 0))
    out_spec = pl.BlockSpec((eff_block, _OUT_PAD), lambda i: (i, 0))

    def resident(arr):
        # Constant index map -> same block every step, stays resident in VMEM.
        return pl.BlockSpec(arr.shape, lambda i: (0, 0))

    param_order = ("w1", "b1", "w2", "b2", "w3", "b3", "w4", "b4")
    param_args = [prepared[k] for k in param_order]
    in_specs = [x_spec] + [resident(a) for a in param_args]

    # --- Cost estimate (real flops / transcendentals / HBM bytes) -----------
    flops = 2 * B * (_IN_DIM * _HID + 2 * _HID * _HID + _HID * _OUT_DIM)
    transcendentals = B * (3 * _HID + _OUT_DIM)
    bytes_accessed = (
        xc.size * xc.dtype.itemsize
        + b_pad * _OUT_PAD * 4
        + sum(a.size * a.dtype.itemsize for a in param_args)
    )

    out_padded = pl.pallas_call(
        functools.partial(fcnet_kernel, act_dtype=act_dt),
        out_shape=jax.ShapeDtypeStruct((b_pad, _OUT_PAD), jnp.float32),
        grid=(grid_b,),
        in_specs=in_specs,
        out_specs=out_spec,
        compiler_params=pltpu.CompilerParams(
            # Batch axis is independent -> shardable across TCs (v7x megacore).
            dimension_semantics=("parallel",),
            # ~48 MiB: above the 16/32 MiB default scoped limits, with
            # headroom under v7x's 64 MiB physical VMEM for Mosaic scratch.
            vmem_limit_bytes=48 * 1024 * 1024,
        ),
        cost_estimate=pl.CostEstimate(
            flops=flops,
            transcendentals=transcendentals,
            bytes_accessed=bytes_accessed,
        ),
    )(xc, *param_args)

    # Drop the batch padding and the zero-padded output columns (8 -> 3).
    return out_padded[:B, :_OUT_DIM]


def init_fcnet_params(key):
    """Init mimicking torch nn.Linear default (uniform +-1/sqrt(fan_in)).

    Weights stored as (in_dim, out_dim) so the kernel does x @ W + b.
    """
    dims = [(_IN_DIM, _HID), (_HID, _HID), (_HID, _HID), (_HID, _OUT_DIM)]
    params = {}
    keys = jax.random.split(key, 2 * len(dims))
    for idx, (fan_in, fan_out) in enumerate(dims):
        bound = 1.0 / jnp.sqrt(jnp.float32(fan_in))
        w = jax.random.uniform(keys[2 * idx], (fan_in, fan_out),
                               minval=-bound, maxval=bound, dtype=jnp.float32)
        b = jax.random.uniform(keys[2 * idx + 1], (1, fan_out),
                               minval=-bound, maxval=bound, dtype=jnp.float32)
        params[f"w{idx + 1}"] = w
        params[f"b{idx + 1}"] = b
    return params


def fcnet_reference(x, params):
    """Pure-JAX reference of the torch forward pass."""
    h = jnp.tanh(x @ params["w1"] + params["b1"])
    h = jnp.tanh(h @ params["w2"] + params["b2"])
    h = jnp.tanh(h @ params["w3"] + params["b3"])
    return jnp.tanh(h @ params["w4"] + params["b4"])


if __name__ == "__main__":
    key = jax.random.PRNGKey(0)
    pkey, xkey1, xkey2 = jax.random.split(key, 3)

    params = init_fcnet_params(pkey)

    # One-time preps (hoisted out of the forward path).
    prep_f32 = prepare_fcnet_params(params, compute_dtype=jnp.float32)
    prep_bf16 = prepare_fcnet_params(params)  # default bf16 (v6e/v7x)

    # Small, module-consistent check (inputsize fixed at 6 by the module).
    x_small = jax.random.normal(xkey1, (8, 6), dtype=jnp.float32)
    out_small = jax.block_until_ready(fcnet_forward(x_small, prep_f32))
    ref_small = fcnet_reference(x_small, params)
    assert out_small.shape == (8, 3)
    assert jnp.allclose(out_small, ref_small, atol=1e-5, rtol=1e-5), \
        "f32 small-batch mismatch vs reference"

    # Multi-step grid with a ragged tail (exercises padding + >=2-tile path).
    x_ragged = jax.random.normal(xkey2, (300, 6), dtype=jnp.float32)
    out_ragged = jax.block_until_ready(
        fcnet_forward(x_ragged, prep_f32, block_b=128))
    ref_ragged = fcnet_reference(x_ragged, params)
    assert out_ragged.shape == (300, 3)
    assert jnp.allclose(out_ragged, ref_ragged, atol=1e-5, rtol=1e-5), \
        "f32 ragged-batch mismatch vs reference"

    # bf16 matmul + bf16 tanh path (recommended on v6e/v7x); f32 accumulation.
    out_bf16 = jax.block_until_ready(fcnet_forward(x_small, prep_bf16))
    assert out_bf16.shape == (8, 3)
    assert jnp.allclose(out_bf16, ref_small, atol=5e-2), \
        "bf16 path mismatch vs reference"

    # bf16 matmuls but f32 tanh (the v5e-recommended combination).
    out_v5e = jax.block_until_ready(
        fcnet_forward(x_small, prep_bf16, act_dtype=jnp.float32))
    assert jnp.allclose(out_v5e, ref_small, atol=5e-2), \
        "bf16-matmul/f32-tanh path mismatch vs reference"

    print("KERNEL_OK")
</pallas_src>

<mosaic_0001>
module attributes {stable_mosaic.version = 11 : i64} {
  func.func @fcnet_kernel(%arg0: i32, %arg1: memref<8x6xf32, #tpu.memory_space<vmem>>, %arg2: memref<6x128xf32, #tpu.memory_space<vmem>>, %arg3: memref<1x128xf32, #tpu.memory_space<vmem>>, %arg4: memref<128x128xf32, #tpu.memory_space<vmem>>, %arg5: memref<1x128xf32, #tpu.memory_space<vmem>>, %arg6: memref<128x128xf32, #tpu.memory_space<vmem>>, %arg7: memref<1x128xf32, #tpu.memory_space<vmem>>, %arg8: memref<128x8xf32, #tpu.memory_space<vmem>>, %arg9: memref<1x8xf32, #tpu.memory_space<vmem>>, %arg10: memref<8x8xf32, #tpu.memory_space<vmem>>) attributes {dimension_semantics = [#tpu.dimension_semantics<parallel>], iteration_bounds = array<i64: 1>, scalar_prefetch = 0 : i64, scratch_operands = 0 : i64, tpu.core_type = #tpu.core_type<tc>, window_params = [{transform_indices = @transform_0, window_bounds = array<i64: 8, 6>}, {pipeline_mode = #tpu.pipeline_mode<synchronous>, transform_indices = @transform_1, window_bounds = array<i64: 6, 128>}, {pipeline_mode = #tpu.pipeline_mode<synchronous>, transform_indices = @transform_2, window_bounds = array<i64: 1, 128>}, {pipeline_mode = #tpu.pipeline_mode<synchronous>, transform_indices = @transform_3, window_bounds = array<i64: 128, 128>}, {pipeline_mode = #tpu.pipeline_mode<synchronous>, transform_indices = @transform_4, window_bounds = array<i64: 1, 128>}, {pipeline_mode = #tpu.pipeline_mode<synchronous>, transform_indices = @transform_5, window_bounds = array<i64: 128, 128>}, {pipeline_mode = #tpu.pipeline_mode<synchronous>, transform_indices = @transform_6, window_bounds = array<i64: 1, 128>}, {pipeline_mode = #tpu.pipeline_mode<synchronous>, transform_indices = @transform_7, window_bounds = array<i64: 128, 8>}, {pipeline_mode = #tpu.pipeline_mode<synchronous>, transform_indices = @transform_8, window_bounds = array<i64: 1, 8>}, {transform_indices = @transform_9, window_bounds = array<i64: 8, 8>}]} {
    %c0 = arith.constant 0 : index
    %c0_0 = arith.constant 0 : index
    %0 = vector.load %arg1[%c0, %c0_0] : memref<8x6xf32, #tpu.memory_space<vmem>>, vector<8x6xf32>
    %c0_1 = arith.constant 0 : index
    %c0_2 = arith.constant 0 : index
    %1 = vector.load %arg2[%c0_1, %c0_2] : memref<6x128xf32, #tpu.memory_space<vmem>>, vector<6x128xf32>
    %cst = arith.constant dense<0.000000e+00> : vector<8x128xf32>
    %2 = tpu.matmul %0, %1, %cst {dimension_numbers = #tpu.dot_dimension_numbers<[1], [0], [0], [1], [0, 0, 1, 1], [], []>} : vector<8x6xf32>, vector<6x128xf32>, vector<8x128xf32> -> vector<8x128xf32>
    %c0_3 = arith.constant 0 : index
    %c0_4 = arith.constant 0 : index
    %3 = vector.load %arg3[%c0_3, %c0_4] : memref<1x128xf32, #tpu.memory_space<vmem>>, vector<1x128xf32>
    %4 = vector.broadcast %3 : vector<1x128xf32> to vector<8x128xf32>
    %5 = arith.addf %2, %4 : vector<8x128xf32>
    %6 = math.tanh %5 : vector<8x128xf32>
    %c0_5 = arith.constant 0 : index
    %c0_6 = arith.constant 0 : index
    %7 = vector.load %arg4[%c0_5, %c0_6] : memref<128x128xf32, #tpu.memory_space<vmem>>, vector<128x128xf32>
    %cst_7 = arith.constant dense<0.000000e+00> : vector<8x128xf32>
    %8 = tpu.matmul %6, %7, %cst_7 {dimension_numbers = #tpu.dot_dimension_numbers<[1], [0], [0], [1], [0, 0, 1, 1], [], []>} : vector<8x128xf32>, vector<128x128xf32>, vector<8x128xf32> -> vector<8x128xf32>
    %c0_8 = arith.constant 0 : index
    %c0_9 = arith.constant 0 : index
    %9 = vector.load %arg5[%c0_8, %c0_9] : memref<1x128xf32, #tpu.memory_space<vmem>>, vector<1x128xf32>
    %10 = vector.broadcast %9 : vector<1x128xf32> to vector<8x128xf32>
    %11 = arith.addf %8, %10 : vector<8x128xf32>
    %12 = math.tanh %11 : vector<8x128xf32>
    %c0_10 = arith.constant 0 : index
    %c0_11 = arith.constant 0 : index
    %13 = vector.load %arg6[%c0_10, %c0_11] : memref<128x128xf32, #tpu.memory_space<vmem>>, vector<128x128xf32>
    %cst_12 = arith.constant dense<0.000000e+00> : vector<8x128xf32>
    %14 = tpu.matmul %12, %13, %cst_12 {dimension_numbers = #tpu.dot_dimension_numbers<[1], [0], [0], [1], [0, 0, 1, 1], [], []>} : vector<8x128xf32>, vector<128x128xf32>, vector<8x128xf32> -> vector<8x128xf32>
    %c0_13 = arith.constant 0 : index
    %c0_14 = arith.constant 0 : index
    %15 = vector.load %arg7[%c0_13, %c0_14] : memref<1x128xf32, #tpu.memory_space<vmem>>, vector<1x128xf32>
    %16 = vector.broadcast %15 : vector<1x128xf32> to vector<8x128xf32>
    %17 = arith.addf %14, %16 : vector<8x128xf32>
    %18 = math.tanh %17 : vector<8x128xf32>
    %c0_15 = arith.constant 0 : index
    %c0_16 = arith.constant 0 : index
    %19 = vector.load %arg8[%c0_15, %c0_16] : memref<128x8xf32, #tpu.memory_space<vmem>>, vector<128x8xf32>
    %cst_17 = arith.constant dense<0.000000e+00> : vector<8x8xf32>
    %20 = tpu.matmul %18, %19, %cst_17 {dimension_numbers = #tpu.dot_dimension_numbers<[1], [0], [0], [1], [0, 0, 1, 1], [], []>} : vector<8x128xf32>, vector<128x8xf32>, vector<8x8xf32> -> vector<8x8xf32>
    %c0_18 = arith.constant 0 : index
    %c0_19 = arith.constant 0 : index
    %21 = vector.load %arg9[%c0_18, %c0_19] : memref<1x8xf32, #tpu.memory_space<vmem>>, vector<1x8xf32>
    %22 = vector.broadcast %21 : vector<1x8xf32> to vector<8x8xf32>
    %23 = arith.addf %20, %22 : vector<8x8xf32>
    %24 = math.tanh %23 : vector<8x8xf32>
    %c0_20 = arith.constant 0 : index
    %c0_21 = arith.constant 0 : index
    %25 = vector.load %arg10[%c0_20, %c0_21] : memref<8x8xf32, #tpu.memory_space<vmem>>, vector<8x8xf32>
    tpu.vector_store %arg10[%c0_20, %c0_21], %24 {strides = array<i32>} : memref<8x8xf32, #tpu.memory_space<vmem>>, vector<8x8xf32>,
    return
  }
  func.func @transform_0(%arg0: i32) -> (i32, i32) {
    %c0_i32 = arith.constant 0 : i32
    %c0_i32_0 = arith.constant 0 : i32
    return %arg0, %c0_i32 : i32, i32
  }
  func.func @transform_1(%arg0: i32) -> (i32, i32) {
    %c0_i32 = arith.constant 0 : i32
    %c0_i32_0 = arith.constant 0 : i32
    %c0_i32_1 = arith.constant 0 : i32
    return %c0_i32, %c0_i32_0 : i32, i32
  }
  func.func @transform_2(%arg0: i32) -> (i32, i32) {
    %c0_i32 = arith.constant 0 : i32
    %c0_i32_0 = arith.constant 0 : i32
    %c0_i32_1 = arith.constant 0 : i32
    return %c0_i32, %c0_i32_0 : i32, i32
  }
  func.func @transform_3(%arg0: i32) -> (i32, i32) {
    %c0_i32 = arith.constant 0 : i32
    %c0_i32_0 = arith.constant 0 : i32
    %c0_i32_1 = arith.constant 0 : i32
    return %c0_i32, %c0_i32_0 : i32, i32
  }
  func.func @transform_4(%arg0: i32) -> (i32, i32) {
    %c0_i32 = arith.constant 0 : i32
    %c0_i32_0 = arith.constant 0 : i32
    %c0_i32_1 = arith.constant 0 : i32
    return %c0_i32, %c0_i32_0 : i32, i32
  }
  func.func @transform_5(%arg0: i32) -> (i32, i32) {
    %c0_i32 = arith.constant 0 : i32
    %c0_i32_0 = arith.constant 0 : i32
    %c0_i32_1 = arith.constant 0 : i32
    return %c0_i32, %c0_i32_0 : i32, i32
  }
  func.func @transform_6(%arg0: i32) -> (i32, i32) {
    %c0_i32 = arith.constant 0 : i32
    %c0_i32_0 = arith.constant 0 : i32
    %c0_i32_1 = arith.constant 0 : i32
    return %c0_i32, %c0_i32_0 : i32, i32
  }
  func.func @transform_7(%arg0: i32) -> (i32, i32) {
    %c0_i32 = arith.constant 0 : i32
    %c0_i32_0 = arith.constant 0 : i32
    %c0_i32_1 = arith.constant 0 : i32
    return %c0_i32, %c0_i32_0 : i32, i32
  }
  func.func @transform_8(%arg0: i32) -> (i32, i32) {
    %c0_i32 = arith.constant 0 : i32
    %c0_i32_0 = arith.constant 0 : i32
    %c0_i32_1 = arith.constant 0 : i32
    return %c0_i32, %c0_i32_0 : i32, i32
  }
  func.func @transform_9(%arg0: i32) -> (i32, i32) {
    %c0_i32 = arith.constant 0 : i32
    %c0_i32_0 = arith.constant 0 : i32
    return %arg0, %c0_i32 : i32, i32
  }
}

</mosaic_0001>

<bundles_post_ra>
// kernel: fcnet_forward.1
= control target key start
LH: loop header
LB: loop body
LE: loop exit
PB: predicated region body
PF: predicated region fallthrough
CT: control target
= control target key end

     0   :  { %14 = vsyncpa [#allocation3], 0  ;;  %s702_s30 = smov [#allocation2]   ;;  %s920_s0 = inlined_call_operand.vmem [shape: f32[8,6], index: 0, kind: input, shape index: {}]   ;;  %s921_s1 = inlined_call_operand.vmem [shape: f32[6,128], index: 1, kind: input, shape index: {}]   ;;  %s922_s2 = inlined_call_operand.vmem [shape: f32[1,128], index: 2, kind: input, shape index: {}]   ;;  %s923_s3 = inlined_call_operand.vmem [shape: f32[128,128], index: 3, kind: input, shape index: {}]   ;;  %s924_s4 = inlined_call_operand.vmem [shape: f32[1,128], index: 4, kind: input, shape index: {}]   ;;  %s925_s5 = inlined_call_operand.hbm [shape: f32[128,128], index: 5, kind: input, shape index: {}]   ;;  %s926_s6 = inlined_call_operand.vmem [shape: f32[1,128], index: 6, kind: input, shape index: {}]   ;;  %s927_s7 = inlined_call_operand.vmem [shape: f32[128,8], index: 7, kind: input, shape index: {}]   ;;  %s928_s8 = inlined_call_operand.vmem [shape: f32[1,8], index: 8, kind: input, shape index: {}]   ;;  %s929_s9 = inlined_call_operand.vmem [shape: f32[8,8], index: 9, kind: output, shape index: {}]  }
   0x1   :  { %s30_s10 = sshll.u32 %s702_s30, 4  ;;  %s678_s13 = scalar_lea.hbm %s925_s5, 2048  ;;  %s31_s10 = int_to_ptr.vmem [resolvable:$true] %s30_s10 }
   0x2   :  { %p679_p0 = scmp.ne.s32.totalorder %s925_s5, %s678_s13  ;;  %p682_p1 = scmp.lt.u32.totalorder %s678_s13, %s925_s5 }
   0x4   :  { %p684_p2 = pnand %p682_p1, %p679_p0 }
   0x6   :  { %687 = shalt.err (!%p684_p2)
}
   0x7   :  { %s688_s18 = scalar_lea.vmem %s31_s10, 2048  ;;  %p693_p4 = scmp.lt.s32.totalorder %s31_s10, %s31_s10 }
   0x8   :  { %p689_p3 = scmp.ne.s32.totalorder %s31_s10, %s688_s18  ;;  %p694_p5 = scmp.lt.s32.totalorder %s688_s18, %s688_s18 }
   0xa   :  { %p695_p6 = por %p694_p5, %p693_p4 }
   0xc   :  { %p696_p7 = pnand %p695_p6, %p689_p3 }
   0xe   :  { %699 = shalt.err (!%p696_p7)
}
   0xf   :  { %s703_s19 = smov 128   ;;  %s704_s20 = smov 8  }
  0x10   :  { %36 = dma.hbm_to_vmem [thread:$0]  %s925_s5, 2048, %s31_s10, [#allocation3], %s703_s19, %s703_s19, %s704_s20  }
  0x11   :  { %700 = dma.done.wait [#allocation3], 2048  }
  0x12   :  { %701 = vsyncadd [#allocation3], 4294965248  ;;  %v705_v0 = vmov 0.0   ;;  %vm706_vm0 = vmmov 0   ;;  %v707_v1 = vmov 0.0|0.0   ;;  %vm59_vm1 = vcmask 1045504  }
  0x13   :  { %482 = vmatprep.subr.mxu0 %v705_v0  ;;  %484 = vmatprep.mubr.msk.f32.mxu0 %vm706_vm0, %v705_v0  ;;  %vm55_vm2 = vcmask 48128   ;;  %v47_v2 = vld [vmem:[%s921_s1] sm:$0x3f]  ;;  %v135_v5 = vld [vmem:[%s923_s3 + $0x8] sm:$0xff]  ;;  %v136_v6 = vld [vmem:[%s923_s3 + $0x10] sm:$0xff]  ;;  %vm416_vm3 = vcmask 64512  }
  0x14   :  { %592 = vmatprep.subr.bf16.mxu1 %v707_v1  ;;  %519 = vmatprep.mubr.msk.f32.mxu1 %vm706_vm0, %v705_v0  ;;  %v46_v3 = vld [vmem:[%s920_s0] sm:$0xff]  ;;  %v137_v7 = vld [vmem:[%s923_s3 + $0x18] sm:$0xff]  ;;  %v139_v11 = vld [vmem:[%s923_s3 + $0x28] sm:$0xff] }
  0x15   :  { %v134_v4 = vld [vmem:[%s923_s3] sm:$0xff]  ;;  %483 = vmatpush3.msk.msra.mxu0 %vm59_vm1, %v47_v2  ;;  %v596_v9 = vpack.c.bf16 %v137_v7, %v136_v6  ;;  %v140_v13 = vld [vmem:[%s923_s3 + $0x30] sm:$0xff]  ;;  %v141_v14 = vld [vmem:[%s923_s3 + $0x38] sm:$0xff] }
  0x16   :  { %485 = vmatmul.mubr.msk.f32.vlgmr.msra.gmra.mrb[0].mxu0 %vm55_vm2, %v46_v3  ;;  %v593_v8 = vpack.c.bf16 %v135_v5, %v134_v4  ;;  %616 = vmatprep.subr.bf16.mxu0 %v707_v1  ;;  %v138_v10 = vld [vmem:[%s923_s3 + $0x20] sm:$0xff]  ;;  %v602_v15 = vpack.c.bf16 %v141_v14, %v140_v13  ;;  %v143_v17 = vld [vmem:[%s923_s3 + $0x48] sm:$0xff]  ;;  %v144_v19 = vld [vmem:[%s923_s3 + $0x50] sm:$0xff] }
  0x17   :  { %554 = vmatprep.mubr.msk.f32.mxu0 %vm706_vm0, %v705_v0  ;;  %v599_v12 = vpack.c.bf16 %v139_v11, %v138_v10  ;;  %v142_v16 = vld [vmem:[%s923_s3 + $0x40] sm:$0xff]  ;;  %v145_v20 = vld [vmem:[%s923_s3 + $0x58] sm:$0xff]  ;;  %v147_v23 = vld [vmem:[%s923_s3 + $0x68] sm:$0xff] }
  0x18   :  { %594 = vmatpush3.bf16.msra.mxu1 %v593_v8  ;;  %v605_v18 = vpack.c.bf16 %v143_v17, %v142_v16  ;;  %v608_v21 = vpack.c.bf16 %v145_v20, %v144_v19  ;;  %v146_v22 = vld [vmem:[%s923_s3 + $0x60] sm:$0xff]  ;;  %v148_v25 = vld [vmem:[%s923_s3 + $0x70] sm:$0xff]  ;;  %v149_v26 = vld [vmem:[%s923_s3 + $0x78] sm:$0xff] }
  0x19   :  { %595 = vmatprep.subr.bf16.mxu1 %v707_v1  ;;  %v611_v24 = vpack.c.bf16 %v147_v23, %v146_v22  ;;  %v614_v27 = vpack.c.bf16 %v149_v26, %v148_v25  ;;  %v228_v28 = vld [vmem:[#allocation2] sm:$0xff]  ;;  %v229_v29 = vld [vmem:[#allocation2 + $0x8] sm:$0xff]  ;;  %v230_v30 = vld [vmem:[#allocation2 + $0x10] sm:$0xff] }
  0x1a   :  { %v617_v31 = vpack.c.bf16 %v229_v29, %v228_v28  ;;  %v231_v32 = vld [vmem:[#allocation2 + $0x18] sm:$0xff]  ;;  %v232_v34 = vld [vmem:[#allocation2 + $0x20] sm:$0xff]  ;;  %v233_v35 = vld [vmem:[#allocation2 + $0x28] sm:$0xff] }
  0x1b   :  { %v620_v33 = vpack.c.bf16 %v231_v32, %v230_v30  ;;  %v623_v36 = vpack.c.bf16 %v233_v35, %v232_v34  ;;  %v234_v37 = vld [vmem:[#allocation2 + $0x30] sm:$0xff]  ;;  %v235_v38 = vld [vmem:[#allocation2 + $0x38] sm:$0xff]  ;;  %v236_v40 = vld [vmem:[#allocation2 + $0x40] sm:$0xff] }
  0x1c   :  { %597 = vmatpush3.bf16.msra.mxu1 %v596_v9  ;;  %618 = vmatpush3.bf16.msra.mxu0 %v617_v31  ;;  %v626_v39 = vpack.c.bf16 %v235_v38, %v234_v37  ;;  %v237_v41 = vld [vmem:[#allocation2 + $0x48] sm:$0xff]  ;;  %v423_v43 = vld [vmem:[%s922_s2] ss:$0 sm:$0xff]  ;;  %v238_v48 = vld [vmem:[#allocation2 + $0x50] sm:$0xff] }
  0x1d   :  { %598 = vmatprep.subr.bf16.mxu1 %v707_v1  ;;  %619 = vmatprep.subr.bf16.mxu0 %v707_v1  ;;  %v629_v42 = vpack.c.bf16 %v237_v41, %v236_v40  ;;  %v239_v49 = vld [vmem:[#allocation2 + $0x58] sm:$0xff]  ;;  %v240_v51 = vld [vmem:[#allocation2 + $0x60] sm:$0xff]  ;;  %v241_v52 = vld [vmem:[#allocation2 + $0x68] sm:$0xff] }
  0x1e   :  { %v632_v50 = vpack.c.bf16 %v239_v49, %v238_v48  ;;  %v635_v53 = vpack.c.bf16 %v241_v52, %v240_v51  ;;  %v242_v54 = vld [vmem:[#allocation2 + $0x70] sm:$0xff]  ;;  %v243_v55 = vld [vmem:[#allocation2 + $0x78] sm:$0xff]  ;;  %v322_v57 = vld [vmem:[%s927_s7] sm:$0xff] }
  0x1f   :  { %v638_v56 = vpack.c.bf16 %v243_v55, %v242_v54  ;;  %v323_v58 = vld [vmem:[%s927_s7 + $0x8] sm:$0xff]  ;;  %v324_v59 = vld [vmem:[%s927_s7 + $0x10] sm:$0xff]  ;;  %v325_v61 = vld [vmem:[%s927_s7 + $0x18] sm:$0xff] }
  0x20   :  { %600 = vmatpush3.bf16.msra.mxu1 %v599_v12  ;;  %621 = vmatpush3.bf16.msra.mxu0 %v620_v33  ;;  %v641_v60 = vpack.c.bf16 %v323_v58, %v322_v57  ;;  %v644_v62 = vpack.c.bf16 %v325_v61, %v324_v59  ;;  %v326_v63 = vld [vmem:[%s927_s7 + $0x20] sm:$0xff]  ;;  %v328_v3 = vld [vmem:[%s927_s7 + $0x30] sm:$0xff]  ;;  %v329_v4 = vld [vmem:[%s927_s7 + $0x38] sm:$0xff] }
  0x21   :  { %601 = vmatprep.subr.bf16.mxu1 %v707_v1  ;;  %622 = vmatprep.subr.bf16.mxu0 %v707_v1  ;;  %v650_v5 = vpack.c.bf16 %v329_v4, %v328_v3  ;;  %v330_v6 = vld [vmem:[%s927_s7 + $0x40] sm:$0xff]  ;;  %v331_v7 = vld [vmem:[%s927_s7 + $0x48] sm:$0xff]  ;;  %v332_v14 = vld [vmem:[%s927_s7 + $0x50] sm:$0xff] }
  0x22   :  { %v653_v8 = vpack.c.bf16 %v331_v7, %v330_v6  ;;  %v426_v9 = vld [vmem:[%s924_s4] ss:$0 sm:$0xff]  ;;  %v336_v20 = vld [vmem:[%s927_s7 + $0x70] sm:$0xff] }
  0x23   :  { %v334_v17 = vld [vmem:[%s927_s7 + $0x60] sm:$0xff] }
  0x24   :  { %603 = vmatpush3.bf16.msra.mxu1 %v602_v15  ;;  %624 = vmatpush3.bf16.msra.mxu0 %v623_v36  ;;  %v333_v15 = vld [vmem:[%s927_s7 + $0x58] sm:$0xff]  ;;  %v427_v23 = vld [vmem:[%s926_s6] ss:$0 sm:$0xff] }
  0x25   :  { %604 = vmatprep.subr.bf16.mxu1 %v707_v1  ;;  %625 = vmatprep.subr.bf16.mxu0 %v707_v1  ;;  %v656_v16 = vpack.c.bf16 %v333_v15, %v332_v14  ;;  %v428_v28 = vld [vmem:[%s928_s8] ss:$0 sm:$0xff] }
  0x28   :  { %606 = vmatpush3.bf16.msra.mxu1 %v605_v18  ;;  %627 = vmatpush3.bf16.msra.mxu0 %v626_v39  ;;  %v335_v18 = vld [vmem:[%s927_s7 + $0x68] sm:$0xff] }
  0x29   :  { %607 = vmatprep.subr.bf16.mxu1 %v707_v1  ;;  %628 = vmatprep.subr.bf16.mxu0 %v707_v1  ;;  %v659_v19 = vpack.c.bf16 %v335_v18, %v334_v17 }
  0x2c   :  { %609 = vmatpush3.bf16.msra.mxu1 %v608_v21  ;;  %630 = vmatpush3.bf16.msra.mxu0 %v629_v42  ;;  %v337_v21 = vld [vmem:[%s927_s7 + $0x78] sm:$0xff] }
  0x2d   :  { %610 = vmatprep.subr.bf16.mxu1 %v707_v1  ;;  %631 = vmatprep.subr.bf16.mxu0 %v707_v1  ;;  %v662_v22 = vpack.c.bf16 %v337_v21, %v336_v20 }
  0x30   :  { %612 = vmatpush3.bf16.msra.mxu1 %v611_v24  ;;  %633 = vmatpush3.bf16.msra.mxu0 %v632_v50 }
  0x31   :  { %613 = vmatprep.subr.bf16.mxu1 %v707_v1  ;;  %634 = vmatprep.subr.bf16.mxu0 %v707_v1 }
  0x34   :  { %615 = vmatpush3.bf16.msra.mxu1 %v614_v27  ;;  %636 = vmatpush3.bf16.msra.mxu0 %v635_v53 }
  0x35   :  { %640 = vmatprep.subr.bf16.mxu1 %v707_v1  ;;  %637 = vmatprep.subr.bf16.mxu0 %v707_v1 }
  0x38   :  { %639 = vmatpush3.bf16.msra.mxu0 %v638_v56 }
  0xe9   :  { %v129_v44 = vpop.f32.mrb[0].mxu0 }
  0xea   :  { %v130_v45 = vadd.f32 %v423_v43, %v129_v44  ;;  %v486_v46 = vpop.f32.mrb[1].mxu0 }
  0xec   :  { %670 = vtanh.f32 %v130_v45 }
  0xf6   :  { %v671_v47 = vpop.eup %670 }
  0xf7   :  { %520 = vmatmul.mubr.f32.vlgmr.msra.gmra.mrb[0].mxu1 %v671_v47 }
  0xf8   :  { %589 = vmatprep.mubr.msk.f32.mxu1 %vm706_vm0, %v705_v0  ;;  %642 = vmatpush3.bf16.msra.mxu1 %v641_v60  ;;  %v327_v0 = vld [vmem:[%s927_s7 + $0x28] sm:$0xff] }
  0xf9   :  { %643 = vmatprep.subr.bf16.mxu1 %v707_v1  ;;  %v647_v2 = vpack.c.bf16 %v327_v0, %v326_v63 }
  0xfc   :  { %645 = vmatpush3.bf16.msra.mxu1 %v644_v62 }
  0xfd   :  { %646 = vmatprep.subr.bf16.mxu1 %v707_v1 }
 0x100   :  { %648 = vmatpush3.bf16.msra.mxu1 %v647_v2 }
 0x101   :  { %649 = vmatprep.subr.bf16.mxu1 %v707_v1 }
 0x104   :  { %651 = vmatpush3.bf16.msra.mxu1 %v650_v5 }
 0x105   :  { %652 = vmatprep.subr.bf16.mxu1 %v707_v1 }
 0x108   :  { %654 = vmatpush3.bf16.msra.mxu1 %v653_v8 }
 0x109   :  { %655 = vmatprep.subr.bf16.mxu1 %v707_v1 }
 0x10c   :  { %657 = vmatpush3.bf16.msra.mxu1 %v656_v16 }
 0x10d   :  { %658 = vmatprep.subr.bf16.mxu1 %v707_v1 }
 0x110   :  { %660 = vmatpush3.bf16.msra.mxu1 %v659_v19 }
 0x111   :  { %661 = vmatprep.subr.bf16.mxu1 %v707_v1 }
 0x114   :  { %663 = vmatpush3.bf16.msra.mxu1 %v662_v22 }
 0x1ca   :  { %v223_v10 = vpop.f32.mrb[0].mxu1 }
 0x1cb   :  { %v224_v11 = vadd.f32 %v426_v9, %v223_v10  ;;  %v521_v12 = vpop.f32.mrb[1].mxu1 }
 0x1cd   :  { %672 = vtanh.f32 %v224_v11 }
 0x1d7   :  { %v673_v13 = vpop.eup %672 }
 0x1d8   :  { %555 = vmatmul.mubr.f32.vlgmr.msra.gmra.mrb[2].mxu0 %v673_v13 }
 0x2ab   :  { %v317_v24 = vpop.f32.mrb[2].mxu0 }
 0x2ac   :  { %v318_v25 = vadd.f32 %v427_v23, %v317_v24  ;;  %v556_v26 = vpop.f32.mrb[3].mxu0 }
 0x2ae   :  { %674 = vtanh.f32 %v318_v25 }
 0x2b8   :  { %v675_v27 = vpop.eup %674 }
 0x2b9   :  { %590 = vmatmul.mubr.f32.vlgmr.msra.gmra.mrb[2].mxu1 %v675_v27 }
 0x38c   :  { %v411_v29 = vpop.f32.mrb[2].mxu1 }
 0x38d   :  { %v412_v30 = vadd.f32 %v428_v28, %v411_v29  ;;  %v591_v31 = vpop.f32.mrb[3].mxu1 }
 0x38f   :  { %676 = vtanh.f32 %v412_v30 }
 0x399   :  { %v677_v1 = vpop.eup %676 }
 0x39a   :  { %417 = vst.msk [vmem:[%s929_s9] sm:$0xff] %vm416_vm3, %v677_v1 }
 0x39b   :  { %422 = vsyncpa [#allocation3], 1 }

</bundles_post_ra>
